<compile_context>
chip_gen: v7x
topology: tpu7x:2x2x1
jax: 0.10.0
libtpu: 0.0.40
codegen_flags: <defaults>
</compile_context>

<pallas_src>
import functools

import numpy as np
import jax
import jax.numpy as jnp
from jax import lax
from jax.experimental import pallas as pl
from jax.experimental.pallas import tpu as pltpu

# ---------------------------------------------------------------------------
# Fixed synthetic config (stands in for the module's external config.py)
# ---------------------------------------------------------------------------
INPUT_SIZE = (16, 16)
CONV_CFG = [            # (in_ch, out_ch, ksize, stride, pad)  -- stride 1, "same" pad
    (1, 8, 3, 1, 1),
    (8, 16, 3, 1, 1),
]
LINEAR_OUT = [32, 10]
NUM_CLASSES = LINEAR_OUT[-1]

H0, W0 = INPUT_SIZE            # conv1 spatial
H1, W1 = H0 // 2, W0 // 2      # conv2 spatial (after pool1)
H2, W2 = H1 // 2, W1 // 2      # flatten spatial (after pool2)
CIN = CONV_CFG[0][0]           # 1
C1 = CONV_CFG[0][1]            # 8
C2 = CONV_CFG[1][1]            # 16
FLAT = C2 * H2 * W2            # 256

# images per grid step: >=32 -> conv M >= 256 (fills v6e/v7x MXU rows); multiple of 8
# keeps all row shifts / slices sublane-tile aligned.  For small demo batches it is
# clamped down (but kept a multiple of 8).
DEFAULT_B_TILE = 32


# ---------------------------------------------------------------------------
# In-kernel helpers (values only; traced inline into the fused kernel)
# ---------------------------------------------------------------------------
def _shift_up(x, k):
    """result[g] = x[g + k]; bottom k rows are zero ("same"-padding mask built in)."""
    pad = jnp.zeros((k, x.shape[1]), x.dtype)
    return jnp.concatenate([x[k:, :], pad], axis=0)


def _shift_down(x, k):
    """result[g] = x[g - k]; top k rows are zero."""
    pad = jnp.zeros((k, x.shape[1]), x.dtype)
    return jnp.concatenate([pad, x[:-k, :]], axis=0)


def _conv3x3(x, t_ref, bias_row, k):
    """3x3 stride-1 'same' conv + bias + ReLU in folded H-major (H*B, W*Cin) layout.

    k = B*row_step = folded-row distance between vertically adjacent image rows
    (B for dense rows, 2B when valid rows are stride-2 sparse after pool1).
    t_ref: (3, W*Cin, W*Cout) bf16 banded weights (horizontal taps + pad folded in).
    """
    acc = jnp.dot(_shift_down(x, k).astype(jnp.bfloat16), t_ref[0],
                  preferred_element_type=jnp.float32)
    acc = acc + jnp.dot(x.astype(jnp.bfloat16), t_ref[1],
                        preferred_element_type=jnp.float32)
    acc = acc + jnp.dot(_shift_up(x, k).astype(jnp.bfloat16), t_ref[2],
                        preferred_element_type=jnp.float32)
    return jnp.maximum(acc + bias_row, 0.0)


def _maxpool2x2(y, s_ref, k, half):
    """2x2 stride-2 max pool: one fused column-select matmul (both parities packed in
    a single (W*C, W*C) matrix), max of the two 64-lane halves, then an elementwise
    max with the k-shifted rows.  Result rows stay on the stride-2 lattice."""
    m = jnp.dot(y.astype(jnp.bfloat16), s_ref[...], preferred_element_type=jnp.float32)
    h = jnp.maximum(m[:, :half], m[:, half:])
    return jnp.maximum(h, _shift_up(h, k))


def _fused_forward_kernel(x_ref, t1_ref, bc1_ref, s1_ref, t2_ref, bc2_ref, s2_ref,
                          w1_ref, b1_ref, w2_ref, b2_ref, o_ref,
                          *, b_tile, apply_softmax):
    B = b_tile
    x = x_ref[...].reshape(H0 * B, W0 * CIN)             # H-major fold: row g = r*B + b

    # ConvBlock 1: conv(1->8, 3x3, s1, p1) + ReLU + maxpool(2,2) -> valid rows r%2==0
    y1 = _conv3x3(x, t1_ref, bc1_ref[...], B)             # (16B, 128)
    p1 = _maxpool2x2(y1, s1_ref, B, (W0 // 2) * C1)       # (16B, 64)

    # ConvBlock 2 on the sparse (stride-2) rows -> valid rows r%4==0 afterwards
    y2 = _conv3x3(p1, t2_ref, bc2_ref[...], 2 * B)        # (16B, 128)
    p2 = _maxpool2x2(y2, s2_ref, 2 * B, (W1 // 2) * C2)   # (16B, 64)

    # Flatten + Linear(256->32) + ReLU: pooled row t lives in rows [4tB, 4tB + B)
    z = jnp.zeros((B, LINEAR_OUT[0]), jnp.float32)
    for t in range(H2):
        rows = p2[4 * t * B:(4 * t + 1) * B, :]           # contiguous (B, 64) slice
        z = z + jnp.dot(rows.astype(jnp.bfloat16), w1_ref[t],
                        preferred_element_type=jnp.float32)
    z = jnp.maximum(z + b1_ref[...], 0.0)

    # Linear(32->10) + ReLU
    z = jnp.dot(z.astype(jnp.bfloat16), w2_ref[...],
                preferred_element_type=jnp.float32) + b2_ref[...]
    z = jnp.maximum(z, 0.0)                               # (B, 10)

    if apply_softmax:
        zmax = jnp.max(z, axis=-1, keepdims=True)
        e = jnp.exp(z - zmax)
        z = e * pl.reciprocal(jnp.sum(e, axis=-1, keepdims=True), approx=True)

    o_ref[...] = z


# ---------------------------------------------------------------------------
# One-time host-side parameter packing (banded / selection matrices, bf16 cast)
# ---------------------------------------------------------------------------
def _banded_weight(w_oihw, dy, w_spatial, pad):
    cout, cin, _, kw = w_oihw.shape
    t = np.zeros((w_spatial * cin, w_spatial * cout), np.float32)
    for wo in range(w_spatial):
        for dx in range(kw):
            wi = wo + dx - pad
            if 0 <= wi < w_spatial:
                t[wi * cin:(wi + 1) * cin, wo * cout:(wo + 1) * cout] = w_oihw[:, :, dy, dx].T
    return t


def _pool_col_select(w_spatial, c, parity):
    s = np.zeros((w_spatial * c, (w_spatial // 2) * c), np.float32)
    for wo in range(w_spatial // 2):
        for ch in range(c):
            s[(2 * wo + parity) * c + ch, wo * c + ch] = 1.0
    return s


def init_params(key):
    """Raw parameters in PyTorch conventions: conv OIHW weights; linear weights as
    (in, out) matrices, the first linear's `in` axis in NCHW-flatten order."""
    raw = {"conv": [], "linear": []}
    for (cin, cout, k, _, _) in CONV_CFG:
        key, kw, kb = jax.random.split(key, 3)
        w = 0.1 * jax.random.normal(kw, (cout, cin, k, k), jnp.float32)
        b = 0.1 * jax.random.normal(kb, (cout,), jnp.float32)
        raw["conv"].append((w, b))
    in_f = FLAT
    for out_f in LINEAR_OUT:
        key, kw, kb = jax.random.split(key, 3)
        w = 0.1 * jax.random.normal(kw, (in_f, out_f), jnp.float32)
        b = 0.1 * jax.random.normal(kb, (out_f,), jnp.float32)
        raw["linear"].append((w, b))
        in_f = out_f
    return raw


def pack_params(raw):
    """One-time repack into kernel-ready, lane-dense matrices (matmul weights in bf16)."""
    (w1c, b1c), (w2c, b2c) = [(np.asarray(w, np.float32), np.asarray(b, np.float32))
                              for (w, b) in raw["conv"]]
    (w1l, b1l), (w2l, b2l) = [(np.asarray(w, np.float32), np.asarray(b, np.float32))
                              for (w, b) in raw["linear"]]
    k1, pd1 = CONV_CFG[0][2], CONV_CFG[0][4]
    k2, pd2 = CONV_CFG[1][2], CONV_CFG[1][4]

    t1 = np.stack([_banded_weight(w1c, dy, W0, pd1) for dy in range(k1)])   # (3, 16, 128)
    t2 = np.stack([_banded_weight(w2c, dy, W1, pd2) for dy in range(k2)])   # (3, 64, 128)
    s1 = np.concatenate([_pool_col_select(W0, C1, 0),
                         _pool_col_select(W0, C1, 1)], axis=1)              # (128, 128)
    s2 = np.concatenate([_pool_col_select(W1, C2, 0),
                         _pool_col_select(W1, C2, 1)], axis=1)              # (128, 128)

    # Linear-1 rows regrouped per pooled output row t and permuted so the kernel
    # consumes the packed-NHWC row slices directly (exact torch x.view(N,-1) numerics).
    w1p = np.zeros((H2, W2 * C2, LINEAR_OUT[0]), np.float32)
    for t in range(H2):
        for j in range(W2):
            for c in range(C2):
                w1p[t, j * C2 + c, :] = w1l[c * H2 * W2 + t * W2 + j, :]

    bf = jnp.bfloat16
    return {
        "t1": jnp.asarray(t1, bf), "bc1": jnp.asarray(np.tile(b1c, W0)[None, :]),
        "s1": jnp.asarray(s1, bf),
        "t2": jnp.asarray(t2, bf), "bc2": jnp.asarray(np.tile(b2c, W1)[None, :]),
        "s2": jnp.asarray(s2, bf),
        "w1": jnp.asarray(w1p, bf), "b1": jnp.asarray(b1l[None, :]),
        "w2": jnp.asarray(w2l, bf), "b2": jnp.asarray(b2l[None, :]),
    }


# ---------------------------------------------------------------------------
# Forward
# ---------------------------------------------------------------------------
def _round_up(x, m):
    return ((x + m - 1) // m) * m


def _full_spec(arr):
    return pl.BlockSpec(arr.shape, lambda i, _r=arr.ndim: (0,) * _r)


@functools.partial(jax.jit, static_argnames=("usesoftmax", "b_tile"))
def model_forward(packed, x_nchw, usesoftmax=True, b_tile=None):
    if x_nchw.ndim != 4 or x_nchw.shape[2:4] != INPUT_SIZE:
        raise ValueError(f"Input must be 4D NCHW with spatial size {INPUT_SIZE}")
    n = x_nchw.shape[0]
    if b_tile is None:
        b_tile = min(DEFAULT_B_TILE, _round_up(n, 8))
    n_pad = _round_up(n, b_tile)

    # NCHW -> H-major packed (H, N, W*Cin); zero-pad the batch to a tile multiple.
    x = jnp.transpose(x_nchw.astype(jnp.float32), (2, 0, 3, 1)).reshape(H0, n, W0 * CIN)
    if n_pad != n:
        x = jnp.pad(x, ((0, 0), (0, n_pad - n), (0, 0)))

    names = ("t1", "bc1", "s1", "t2", "bc2", "s2", "w1", "b1", "w2", "b2")
    weights = [packed[k] for k in names]

    out = pl.pallas_call(
        functools.partial(_fused_forward_kernel, b_tile=b_tile, apply_softmax=usesoftmax),
        out_shape=jax.ShapeDtypeStruct((n_pad, NUM_CLASSES), jnp.float32),
        grid=(n_pad // b_tile,),
        in_specs=[pl.BlockSpec((H0, b_tile, W0 * CIN), lambda i: (0, i, 0))]
                 + [_full_spec(w) for w in weights],
        out_specs=pl.BlockSpec((b_tile, NUM_CLASSES), lambda i: (i, 0)),
        compiler_params=pltpu.CompilerParams(dimension_semantics=("parallel",)),
    )(x, *weights)
    return out[:n]


# ---------------------------------------------------------------------------
# Pure-JAX reference (PyTorch semantics) for a correctness check
# ---------------------------------------------------------------------------
def reference_forward(raw, x_nchw, usesoftmax=True):
    x = x_nchw.astype(jnp.float32)
    for (w, b) in raw["conv"]:
        x = lax.conv_general_dilated(x, w, window_strides=(1, 1),
                                     padding=((1, 1), (1, 1)),
                                     dimension_numbers=("NCHW", "OIHW", "NCHW"))
        x = jnp.maximum(x + b.reshape(1, -1, 1, 1), 0.0)
        x = lax.reduce_window(x, -jnp.inf, lax.max,
                              window_dimensions=(1, 1, 2, 2),
                              window_strides=(1, 1, 2, 2), padding="VALID")
    x = x.reshape(x.shape[0], -1)                 # torch x.view(N, -1): NCHW order
    for (w, b) in raw["linear"]:
        x = jnp.maximum(x @ w + b, 0.0)           # LinearBlock: Linear + ReLU (all blocks)
    if usesoftmax:
        x = jax.nn.softmax(x, axis=1)
    return x


if __name__ == "__main__":
    key = jax.random.PRNGKey(0)
    key, pkey, xkey = jax.random.split(key, 3)
    raw = init_params(pkey)
    packed = pack_params(raw)

    x = jax.random.normal(xkey, (2, CIN, INPUT_SIZE[0], INPUT_SIZE[1]), jnp.float32)

    out = jax.block_until_ready(model_forward(packed, x, usesoftmax=True))

    assert out.shape == (2, NUM_CLASSES)
    assert bool(jnp.all(jnp.isfinite(out)))
    # approx reciprocal -> rows sum to 1 only to ~2^-12 relative error
    assert jnp.allclose(jnp.sum(out, axis=1), 1.0, atol=1e-2)

    ref = reference_forward(raw, x, usesoftmax=True)
    max_err = float(jnp.max(jnp.abs(out - ref)))
    # bf16 matmul operands + approx reciprocal -> relaxed tolerance
    assert jnp.allclose(out, ref, atol=2e-2, rtol=2e-2), max_err

    print("KERNEL_OK")
</pallas_src>

<mosaic_0001>
module attributes {stable_mosaic.version = 11 : i64} {
  func.func @_fused_forward_kernel(%arg0: i32, %arg1: memref<16x8x16xf32, #tpu.memory_space<vmem>>, %arg2: memref<3x16x128xbf16, #tpu.memory_space<vmem>>, %arg3: memref<1x128xf32, #tpu.memory_space<vmem>>, %arg4: memref<128x128xbf16, #tpu.memory_space<vmem>>, %arg5: memref<3x64x128xbf16, #tpu.memory_space<vmem>>, %arg6: memref<1x128xf32, #tpu.memory_space<vmem>>, %arg7: memref<128x128xbf16, #tpu.memory_space<vmem>>, %arg8: memref<4x64x32xbf16, #tpu.memory_space<vmem>>, %arg9: memref<1x32xf32, #tpu.memory_space<vmem>>, %arg10: memref<32x10xbf16, #tpu.memory_space<vmem>>, %arg11: memref<1x10xf32, #tpu.memory_space<vmem>>, %arg12: memref<8x10xf32, #tpu.memory_space<vmem>>) attributes {dimension_semantics = [#tpu.dimension_semantics<parallel>], iteration_bounds = array<i64: 1>, scalar_prefetch = 0 : i64, scratch_operands = 0 : i64, tpu.core_type = #tpu.core_type<tc>, window_params = [{transform_indices = @transform_0, window_bounds = array<i64: 16, 8, 16>}, {pipeline_mode = #tpu.pipeline_mode<synchronous>, transform_indices = @transform_1, window_bounds = array<i64: 3, 16, 128>}, {pipeline_mode = #tpu.pipeline_mode<synchronous>, transform_indices = @transform_2, window_bounds = array<i64: 1, 128>}, {pipeline_mode = #tpu.pipeline_mode<synchronous>, transform_indices = @transform_3, window_bounds = array<i64: 128, 128>}, {pipeline_mode = #tpu.pipeline_mode<synchronous>, transform_indices = @transform_4, window_bounds = array<i64: 3, 64, 128>}, {pipeline_mode = #tpu.pipeline_mode<synchronous>, transform_indices = @transform_5, window_bounds = array<i64: 1, 128>}, {pipeline_mode = #tpu.pipeline_mode<synchronous>, transform_indices = @transform_6, window_bounds = array<i64: 128, 128>}, {pipeline_mode = #tpu.pipeline_mode<synchronous>, transform_indices = @transform_7, window_bounds = array<i64: 4, 64, 32>}, {pipeline_mode = #tpu.pipeline_mode<synchronous>, transform_indices = @transform_8, window_bounds = array<i64: 1, 32>}, {pipeline_mode = #tpu.pipeline_mode<synchronous>, transform_indices = @transform_9, window_bounds = array<i64: 32, 10>}, {pipeline_mode = #tpu.pipeline_mode<synchronous>, transform_indices = @transform_10, window_bounds = array<i64: 1, 10>}, {transform_indices = @transform_11, window_bounds = array<i64: 8, 10>}]} {
    %c0 = arith.constant 0 : index
    %c0_0 = arith.constant 0 : index
    %c0_1 = arith.constant 0 : index
    %0 = vector.load %arg1[%c0, %c0_0, %c0_1] : memref<16x8x16xf32, #tpu.memory_space<vmem>>, vector<16x8x16xf32>
    %1 = vector.shape_cast %0 : vector<16x8x16xf32> to vector<128x16xf32>
    %c0_2 = arith.constant 0 : index
    %c0_3 = arith.constant 0 : index
    %2 = vector.load %arg3[%c0_2, %c0_3] : memref<1x128xf32, #tpu.memory_space<vmem>>, vector<1x128xf32>
    %cst = arith.constant 0.000000e+00 : f32
    %3 = vector.broadcast %cst : f32 to vector<8x16xf32>
    %4 = vector.extract_strided_slice %1 {offsets = [0, 0], sizes = [120, 16], strides = [1, 1]} : vector<128x16xf32> to vector<120x16xf32>
    %5 = tpu.concatenate %3, %4 in 0 : vector<8x16xf32>, vector<120x16xf32> -> vector<128x16xf32>
    %6 = arith.truncf %5 : vector<128x16xf32> to vector<128x16xbf16>
    %c0_4 = arith.constant 0 : index
    %c0_5 = arith.constant 0 : index
    %c0_6 = arith.constant 0 : index
    %7 = vector.load %arg2[%c0_4, %c0_5, %c0_6] : memref<3x16x128xbf16, #tpu.memory_space<vmem>>, vector<1x16x128xbf16>
    %8 = vector.shape_cast %7 : vector<1x16x128xbf16> to vector<16x128xbf16>
    %cst_7 = arith.constant dense<0.000000e+00> : vector<128x128xf32>
    %9 = tpu.matmul %6, %8, %cst_7 {dimension_numbers = #tpu.dot_dimension_numbers<[1], [0], [0], [1], [0, 0, 1, 1], [], []>} : vector<128x16xbf16>, vector<16x128xbf16>, vector<128x128xf32> -> vector<128x128xf32>
    %10 = arith.truncf %1 : vector<128x16xf32> to vector<128x16xbf16>
    %c1 = arith.constant 1 : index
    %c0_8 = arith.constant 0 : index
    %c0_9 = arith.constant 0 : index
    %11 = vector.load %arg2[%c1, %c0_8, %c0_9] : memref<3x16x128xbf16, #tpu.memory_space<vmem>>, vector<1x16x128xbf16>
    %12 = vector.shape_cast %11 : vector<1x16x128xbf16> to vector<16x128xbf16>
    %cst_10 = arith.constant dense<0.000000e+00> : vector<128x128xf32>
    %13 = tpu.matmul %10, %12, %cst_10 {dimension_numbers = #tpu.dot_dimension_numbers<[1], [0], [0], [1], [0, 0, 1, 1], [], []>} : vector<128x16xbf16>, vector<16x128xbf16>, vector<128x128xf32> -> vector<128x128xf32>
    %14 = arith.addf %9, %13 : vector<128x128xf32>
    %cst_11 = arith.constant 0.000000e+00 : f32
    %15 = vector.broadcast %cst_11 : f32 to vector<8x16xf32>
    %16 = vector.extract_strided_slice %1 {offsets = [8, 0], sizes = [120, 16], strides = [1, 1]} : vector<128x16xf32> to vector<120x16xf32>
    %17 = tpu.concatenate %16, %15 in 0 : vector<120x16xf32>, vector<8x16xf32> -> vector<128x16xf32>
    %18 = arith.truncf %17 : vector<128x16xf32> to vector<128x16xbf16>
    %c2 = arith.constant 2 : index
    %c0_12 = arith.constant 0 : index
    %c0_13 = arith.constant 0 : index
    %19 = vector.load %arg2[%c2, %c0_12, %c0_13] : memref<3x16x128xbf16, #tpu.memory_space<vmem>>, vector<1x16x128xbf16>
    %20 = vector.shape_cast %19 : vector<1x16x128xbf16> to vector<16x128xbf16>
    %cst_14 = arith.constant dense<0.000000e+00> : vector<128x128xf32>
    %21 = tpu.matmul %18, %20, %cst_14 {dimension_numbers = #tpu.dot_dimension_numbers<[1], [0], [0], [1], [0, 0, 1, 1], [], []>} : vector<128x16xbf16>, vector<16x128xbf16>, vector<128x128xf32> -> vector<128x128xf32>
    %22 = arith.addf %14, %21 : vector<128x128xf32>
    %23 = vector.broadcast %2 : vector<1x128xf32> to vector<128x128xf32>
    %24 = arith.addf %22, %23 : vector<128x128xf32>
    %cst_15 = arith.constant 0.000000e+00 : f32
    %25 = vector.broadcast %cst_15 : f32 to vector<128x128xf32>
    %26 = arith.maximumf %24, %25 : vector<128x128xf32>
    %27 = arith.truncf %26 : vector<128x128xf32> to vector<128x128xbf16>
    %c0_16 = arith.constant 0 : index
    %c0_17 = arith.constant 0 : index
    %28 = vector.load %arg4[%c0_16, %c0_17] : memref<128x128xbf16, #tpu.memory_space<vmem>>, vector<128x128xbf16>
    %cst_18 = arith.constant dense<0.000000e+00> : vector<128x128xf32>
    %29 = tpu.matmul %27, %28, %cst_18 {dimension_numbers = #tpu.dot_dimension_numbers<[1], [0], [0], [1], [0, 0, 1, 1], [], []>} : vector<128x128xbf16>, vector<128x128xbf16>, vector<128x128xf32> -> vector<128x128xf32>
    %30 = vector.extract_strided_slice %29 {offsets = [0, 0], sizes = [128, 64], strides = [1, 1]} : vector<128x128xf32> to vector<128x64xf32>
    %31 = vector.extract_strided_slice %29 {offsets = [0, 64], sizes = [128, 64], strides = [1, 1]} : vector<128x128xf32> to vector<128x64xf32>
    %32 = arith.maximumf %30, %31 : vector<128x64xf32>
    %cst_19 = arith.constant 0.000000e+00 : f32
    %33 = vector.broadcast %cst_19 : f32 to vector<8x64xf32>
    %34 = vector.extract_strided_slice %32 {offsets = [8, 0], sizes = [120, 64], strides = [1, 1]} : vector<128x64xf32> to vector<120x64xf32>
    %35 = tpu.concatenate %34, %33 in 0 : vector<120x64xf32>, vector<8x64xf32> -> vector<128x64xf32>
    %36 = arith.maximumf %32, %35 : vector<128x64xf32>
    %c0_20 = arith.constant 0 : index
    %c0_21 = arith.constant 0 : index
    %37 = vector.load %arg6[%c0_20, %c0_21] : memref<1x128xf32, #tpu.memory_space<vmem>>, vector<1x128xf32>
    %cst_22 = arith.constant 0.000000e+00 : f32
    %38 = vector.broadcast %cst_22 : f32 to vector<16x64xf32>
    %39 = vector.extract_strided_slice %36 {offsets = [0, 0], sizes = [112, 64], strides = [1, 1]} : vector<128x64xf32> to vector<112x64xf32>
    %40 = tpu.concatenate %38, %39 in 0 : vector<16x64xf32>, vector<112x64xf32> -> vector<128x64xf32>
    %41 = arith.truncf %40 : vector<128x64xf32> to vector<128x64xbf16>
    %c0_23 = arith.constant 0 : index
    %c0_24 = arith.constant 0 : index
    %c0_25 = arith.constant 0 : index
    %42 = vector.load %arg5[%c0_23, %c0_24, %c0_25] : memref<3x64x128xbf16, #tpu.memory_space<vmem>>, vector<1x64x128xbf16>
    %43 = vector.shape_cast %42 : vector<1x64x128xbf16> to vector<64x128xbf16>
    %cst_26 = arith.constant dense<0.000000e+00> : vector<128x128xf32>
    %44 = tpu.matmul %41, %43, %cst_26 {dimension_numbers = #tpu.dot_dimension_numbers<[1], [0], [0], [1], [0, 0, 1, 1], [], []>} : vector<128x64xbf16>, vector<64x128xbf16>, vector<128x128xf32> -> vector<128x128xf32>
    %45 = arith.truncf %36 : vector<128x64xf32> to vector<128x64xbf16>
    %c1_27 = arith.constant 1 : index
    %c0_28 = arith.constant 0 : index
    %c0_29 = arith.constant 0 : index
    %46 = vector.load %arg5[%c1_27, %c0_28, %c0_29] : memref<3x64x128xbf16, #tpu.memory_space<vmem>>, vector<1x64x128xbf16>
    %47 = vector.shape_cast %46 : vector<1x64x128xbf16> to vector<64x128xbf16>
    %cst_30 = arith.constant dense<0.000000e+00> : vector<128x128xf32>
    %48 = tpu.matmul %45, %47, %cst_30 {dimension_numbers = #tpu.dot_dimension_numbers<[1], [0], [0], [1], [0, 0, 1, 1], [], []>} : vector<128x64xbf16>, vector<64x128xbf16>, vector<128x128xf32> -> vector<128x128xf32>
    %49 = arith.addf %44, %48 : vector<128x128xf32>
    %cst_31 = arith.constant 0.000000e+00 : f32
    %50 = vector.broadcast %cst_31 : f32 to vector<16x64xf32>
    %51 = vector.extract_strided_slice %36 {offsets = [16, 0], sizes = [112, 64], strides = [1, 1]} : vector<128x64xf32> to vector<112x64xf32>
    %52 = tpu.concatenate %51, %50 in 0 : vector<112x64xf32>, vector<16x64xf32> -> vector<128x64xf32>
    %53 = arith.truncf %52 : vector<128x64xf32> to vector<128x64xbf16>
    %c2_32 = arith.constant 2 : index
    %c0_33 = arith.constant 0 : index
    %c0_34 = arith.constant 0 : index
    %54 = vector.load %arg5[%c2_32, %c0_33, %c0_34] : memref<3x64x128xbf16, #tpu.memory_space<vmem>>, vector<1x64x128xbf16>
    %55 = vector.shape_cast %54 : vector<1x64x128xbf16> to vector<64x128xbf16>
    %cst_35 = arith.constant dense<0.000000e+00> : vector<128x128xf32>
    %56 = tpu.matmul %53, %55, %cst_35 {dimension_numbers = #tpu.dot_dimension_numbers<[1], [0], [0], [1], [0, 0, 1, 1], [], []>} : vector<128x64xbf16>, vector<64x128xbf16>, vector<128x128xf32> -> vector<128x128xf32>
    %57 = arith.addf %49, %56 : vector<128x128xf32>
    %58 = vector.broadcast %37 : vector<1x128xf32> to vector<128x128xf32>
    %59 = arith.addf %57, %58 : vector<128x128xf32>
    %cst_36 = arith.constant 0.000000e+00 : f32
    %60 = vector.broadcast %cst_36 : f32 to vector<128x128xf32>
    %61 = arith.maximumf %59, %60 : vector<128x128xf32>
    %62 = arith.truncf %61 : vector<128x128xf32> to vector<128x128xbf16>
    %c0_37 = arith.constant 0 : index
    %c0_38 = arith.constant 0 : index
    %63 = vector.load %arg7[%c0_37, %c0_38] : memref<128x128xbf16, #tpu.memory_space<vmem>>, vector<128x128xbf16>
    %cst_39 = arith.constant dense<0.000000e+00> : vector<128x128xf32>
    %64 = tpu.matmul %62, %63, %cst_39 {dimension_numbers = #tpu.dot_dimension_numbers<[1], [0], [0], [1], [0, 0, 1, 1], [], []>} : vector<128x128xbf16>, vector<128x128xbf16>, vector<128x128xf32> -> vector<128x128xf32>
    %65 = vector.extract_strided_slice %64 {offsets = [0, 0], sizes = [128, 64], strides = [1, 1]} : vector<128x128xf32> to vector<128x64xf32>
    %66 = vector.extract_strided_slice %64 {offsets = [0, 64], sizes = [128, 64], strides = [1, 1]} : vector<128x128xf32> to vector<128x64xf32>
    %67 = arith.maximumf %65, %66 : vector<128x64xf32>
    %cst_40 = arith.constant 0.000000e+00 : f32
    %68 = vector.broadcast %cst_40 : f32 to vector<16x64xf32>
    %69 = vector.extract_strided_slice %67 {offsets = [16, 0], sizes = [112, 64], strides = [1, 1]} : vector<128x64xf32> to vector<112x64xf32>
    %70 = tpu.concatenate %69, %68 in 0 : vector<112x64xf32>, vector<16x64xf32> -> vector<128x64xf32>
    %71 = arith.maximumf %67, %70 : vector<128x64xf32>
    %cst_41 = arith.constant 0.000000e+00 : f32
    %72 = vector.broadcast %cst_41 : f32 to vector<8x32xf32>
    %73 = vector.extract_strided_slice %71 {offsets = [0, 0], sizes = [8, 64], strides = [1, 1]} : vector<128x64xf32> to vector<8x64xf32>
    %74 = arith.truncf %73 : vector<8x64xf32> to vector<8x64xbf16>
    %c0_42 = arith.constant 0 : index
    %c0_43 = arith.constant 0 : index
    %c0_44 = arith.constant 0 : index
    %75 = vector.load %arg8[%c0_42, %c0_43, %c0_44] : memref<4x64x32xbf16, #tpu.memory_space<vmem>>, vector<1x64x32xbf16>
    %76 = vector.shape_cast %75 : vector<1x64x32xbf16> to vector<64x32xbf16>
    %cst_45 = arith.constant dense<0.000000e+00> : vector<8x32xf32>
    %77 = tpu.matmul %74, %76, %cst_45 {dimension_numbers = #tpu.dot_dimension_numbers<[1], [0], [0], [1], [0, 0, 1, 1], [], []>} : vector<8x64xbf16>, vector<64x32xbf16>, vector<8x32xf32> -> vector<8x32xf32>
    %78 = arith.addf %72, %77 : vector<8x32xf32>
    %79 = vector.extract_strided_slice %71 {offsets = [32, 0], sizes = [8, 64], strides = [1, 1]} : vector<128x64xf32> to vector<8x64xf32>
    %80 = arith.truncf %79 : vector<8x64xf32> to vector<8x64xbf16>
    %c1_46 = arith.constant 1 : index
    %c0_47 = arith.constant 0 : index
    %c0_48 = arith.constant 0 : index
    %81 = vector.load %arg8[%c1_46, %c0_47, %c0_48] : memref<4x64x32xbf16, #tpu.memory_space<vmem>>, vector<1x64x32xbf16>
    %82 = vector.shape_cast %81 : vector<1x64x32xbf16> to vector<64x32xbf16>
    %cst_49 = arith.constant dense<0.000000e+00> : vector<8x32xf32>
    %83 = tpu.matmul %80, %82, %cst_49 {dimension_numbers = #tpu.dot_dimension_numbers<[1], [0], [0], [1], [0, 0, 1, 1], [], []>} : vector<8x64xbf16>, vector<64x32xbf16>, vector<8x32xf32> -> vector<8x32xf32>
    %84 = arith.addf %78, %83 : vector<8x32xf32>
    %85 = vector.extract_strided_slice %71 {offsets = [64, 0], sizes = [8, 64], strides = [1, 1]} : vector<128x64xf32> to vector<8x64xf32>
    %86 = arith.truncf %85 : vector<8x64xf32> to vector<8x64xbf16>
    %c2_50 = arith.constant 2 : index
    %c0_51 = arith.constant 0 : index
    %c0_52 = arith.constant 0 : index
    %87 = vector.load %arg8[%c2_50, %c0_51, %c0_52] : memref<4x64x32xbf16, #tpu.memory_space<vmem>>, vector<1x64x32xbf16>
    %88 = vector.shape_cast %87 : vector<1x64x32xbf16> to vector<64x32xbf16>
    %cst_53 = arith.constant dense<0.000000e+00> : vector<8x32xf32>
    %89 = tpu.matmul %86, %88, %cst_53 {dimension_numbers = #tpu.dot_dimension_numbers<[1], [0], [0], [1], [0, 0, 1, 1], [], []>} : vector<8x64xbf16>, vector<64x32xbf16>, vector<8x32xf32> -> vector<8x32xf32>
    %90 = arith.addf %84, %89 : vector<8x32xf32>
    %91 = vector.extract_strided_slice %71 {offsets = [96, 0], sizes = [8, 64], strides = [1, 1]} : vector<128x64xf32> to vector<8x64xf32>
    %92 = arith.truncf %91 : vector<8x64xf32> to vector<8x64xbf16>
    %c3 = arith.constant 3 : index
    %c0_54 = arith.constant 0 : index
    %c0_55 = arith.constant 0 : index
    %93 = vector.load %arg8[%c3, %c0_54, %c0_55] : memref<4x64x32xbf16, #tpu.memory_space<vmem>>, vector<1x64x32xbf16>
    %94 = vector.shape_cast %93 : vector<1x64x32xbf16> to vector<64x32xbf16>
    %cst_56 = arith.constant dense<0.000000e+00> : vector<8x32xf32>
    %95 = tpu.matmul %92, %94, %cst_56 {dimension_numbers = #tpu.dot_dimension_numbers<[1], [0], [0], [1], [0, 0, 1, 1], [], []>} : vector<8x64xbf16>, vector<64x32xbf16>, vector<8x32xf32> -> vector<8x32xf32>
    %96 = arith.addf %90, %95 : vector<8x32xf32>
    %c0_57 = arith.constant 0 : index
    %c0_58 = arith.constant 0 : index
    %97 = vector.load %arg9[%c0_57, %c0_58] : memref<1x32xf32, #tpu.memory_space<vmem>>, vector<1x32xf32>
    %98 = vector.broadcast %97 : vector<1x32xf32> to vector<8x32xf32>
    %99 = arith.addf %96, %98 : vector<8x32xf32>
    %cst_59 = arith.constant 0.000000e+00 : f32
    %100 = vector.broadcast %cst_59 : f32 to vector<8x32xf32>
    %101 = arith.maximumf %99, %100 : vector<8x32xf32>
    %102 = arith.truncf %101 : vector<8x32xf32> to vector<8x32xbf16>
    %c0_60 = arith.constant 0 : index
    %c0_61 = arith.constant 0 : index
    %103 = vector.load %arg10[%c0_60, %c0_61] : memref<32x10xbf16, #tpu.memory_space<vmem>>, vector<32x10xbf16>
    %cst_62 = arith.constant dense<0.000000e+00> : vector<8x10xf32>
    %104 = tpu.matmul %102, %103, %cst_62 {dimension_numbers = #tpu.dot_dimension_numbers<[1], [0], [0], [1], [0, 0, 1, 1], [], []>} : vector<8x32xbf16>, vector<32x10xbf16>, vector<8x10xf32> -> vector<8x10xf32>
    %c0_63 = arith.constant 0 : index
    %c0_64 = arith.constant 0 : index
    %105 = vector.load %arg11[%c0_63, %c0_64] : memref<1x10xf32, #tpu.memory_space<vmem>>, vector<1x10xf32>
    %106 = vector.broadcast %105 : vector<1x10xf32> to vector<8x10xf32>
    %107 = arith.addf %104, %106 : vector<8x10xf32>
    %cst_65 = arith.constant 0.000000e+00 : f32
    %108 = vector.broadcast %cst_65 : f32 to vector<8x10xf32>
    %109 = arith.maximumf %107, %108 : vector<8x10xf32>
    %cst_66 = arith.constant dense<0xFF800000> : vector<8xf32>
    %110 = vector.multi_reduction <maximumf>, %109, %cst_66 [1] : vector<8x10xf32> to vector<8xf32>
    %111 = vector.shape_cast %110 : vector<8xf32> to vector<8x1xf32>
    %112 = vector.broadcast %111 : vector<8x1xf32> to vector<8x10xf32>
    %113 = arith.subf %109, %112 : vector<8x10xf32>
    %114 = math.exp %113 : vector<8x10xf32>
    %cst_67 = arith.constant dense<0.000000e+00> : vector<8xf32>
    %115 = vector.multi_reduction <add>, %114, %cst_67 [1] : vector<8x10xf32> to vector<8xf32>
    %116 = vector.shape_cast %115 : vector<8xf32> to vector<8x1xf32>
    %117 = tpu.reciprocal %116 {approx = true} : vector<8x1xf32> -> vector<8x1xf32>
    %118 = vector.broadcast %117 : vector<8x1xf32> to vector<8x10xf32>
    %119 = arith.mulf %114, %118 : vector<8x10xf32>
    %c0_68 = arith.constant 0 : index
    %c0_69 = arith.constant 0 : index
    %120 = vector.load %arg12[%c0_68, %c0_69] : memref<8x10xf32, #tpu.memory_space<vmem>>, vector<8x10xf32>
    tpu.vector_store %arg12[%c0_68, %c0_69], %119 {strides = array<i32>} : memref<8x10xf32, #tpu.memory_space<vmem>>, vector<8x10xf32>,
    return
  }
  func.func @transform_0(%arg0: i32) -> (i32, i32, i32) {
    %c0_i32 = arith.constant 0 : i32
    %c0_i32_0 = arith.constant 0 : i32
    %c0_i32_1 = arith.constant 0 : i32
    return %c0_i32, %arg0, %c0_i32_0 : i32, i32, i32
  }
  func.func @transform_1(%arg0: i32) -> (i32, i32, i32) {
    %c0_i32 = arith.constant 0 : i32
    %c0_i32_0 = arith.constant 0 : i32
    %c0_i32_1 = arith.constant 0 : i32
    %c0_i32_2 = arith.constant 0 : i32
    return %c0_i32, %c0_i32_0, %c0_i32_1 : i32, i32, i32
  }
  func.func @transform_2(%arg0: i32) -> (i32, i32) {
    %c0_i32 = arith.constant 0 : i32
    %c0_i32_0 = arith.constant 0 : i32
    %c0_i32_1 = arith.constant 0 : i32
    return %c0_i32, %c0_i32_0 : i32, i32
  }
  func.func @transform_3(%arg0: i32) -> (i32, i32) {
    %c0_i32 = arith.constant 0 : i32
    %c0_i32_0 = arith.constant 0 : i32
    %c0_i32_1 = arith.constant 0 : i32
    return %c0_i32, %c0_i32_0 : i32, i32
  }
  func.func @transform_4(%arg0: i32) -> (i32, i32, i32) {
    %c0_i32 = arith.constant 0 : i32
    %c0_i32_0 = arith.constant 0 : i32
    %c0_i32_1 = arith.constant 0 : i32
    %c0_i32_2 = arith.constant 0 : i32
    return %c0_i32, %c0_i32_0, %c0_i32_1 : i32, i32, i32
  }
  func.func @transform_5(%arg0: i32) -> (i32, i32) {
    %c0_i32 = arith.constant 0 : i32
    %c0_i32_0 = arith.constant 0 : i32
    %c0_i32_1 = arith.constant 0 : i32
    return %c0_i32, %c0_i32_0 : i32, i32
  }
  func.func @transform_6(%arg0: i32) -> (i32, i32) {
    %c0_i32 = arith.constant 0 : i32
    %c0_i32_0 = arith.constant 0 : i32
    %c0_i32_1 = arith.constant 0 : i32
    return %c0_i32, %c0_i32_0 : i32, i32
  }
  func.func @transform_7(%arg0: i32) -> (i32, i32, i32) {
    %c0_i32 = arith.constant 0 : i32
    %c0_i32_0 = arith.constant 0 : i32
    %c0_i32_1 = arith.constant 0 : i32
    %c0_i32_2 = arith.constant 0 : i32
    return %c0_i32, %c0_i32_0, %c0_i32_1 : i32, i32, i32
  }
  func.func @transform_8(%arg0: i32) -> (i32, i32) {
    %c0_i32 = arith.constant 0 : i32
    %c0_i32_0 = arith.constant 0 : i32
    %c0_i32_1 = arith.constant 0 : i32
    return %c0_i32, %c0_i32_0 : i32, i32
  }
  func.func @transform_9(%arg0: i32) -> (i32, i32) {
    %c0_i32 = arith.constant 0 : i32
    %c0_i32_0 = arith.constant 0 : i32
    %c0_i32_1 = arith.constant 0 : i32
    return %c0_i32, %c0_i32_0 : i32, i32
  }
  func.func @transform_10(%arg0: i32) -> (i32, i32) {
    %c0_i32 = arith.constant 0 : i32
    %c0_i32_0 = arith.constant 0 : i32
    %c0_i32_1 = arith.constant 0 : i32
    return %c0_i32, %c0_i32_0 : i32, i32
  }
  func.func @transform_11(%arg0: i32) -> (i32, i32) {
    %c0_i32 = arith.constant 0 : i32
    %c0_i32_0 = arith.constant 0 : i32
    return %arg0, %c0_i32 : i32, i32
  }
}

</mosaic_0001>

<bundles_post_ra>
// kernel: model_forward.1
= control target key start
LH: loop header
LB: loop body
LE: loop exit
PB: predicated region body
PF: predicated region fallthrough
CT: control target
= control target key end

     0   :  { %vm83_vm0 = vcmask 130048   ;;  %v2539_v33 = vmov 0.0   ;;  %s2540_s19 = smov 64   ;;  %vm812_vm1 = vcmask 523264   ;;  %vm2542_vm2 = vmmov 0   ;;  %s2979_s1 = inlined_call_operand.vmem [shape: bf16[3,16,128], index: 1, kind: input, shape index: {}]   ;;  %s2980_s0 = inlined_call_operand.vmem [shape: f32[16,8,16], index: 0, kind: input, shape index: {}]   ;;  %s2981_s3 = inlined_call_operand.vmem [shape: bf16[128,128], index: 3, kind: input, shape index: {}]   ;;  %s2982_s2 = inlined_call_operand.vmem [shape: f32[1,128], index: 2, kind: input, shape index: {}]   ;;  %s2983_s4 = inlined_call_operand.vmem [shape: bf16[3,64,128], index: 4, kind: input, shape index: {}]   ;;  %s2984_s6 = inlined_call_operand.vmem [shape: bf16[128,128], index: 6, kind: input, shape index: {}]   ;;  %s2985_s5 = inlined_call_operand.vmem [shape: f32[1,128], index: 5, kind: input, shape index: {}]   ;;  %s2986_s7 = inlined_call_operand.vmem [shape: bf16[4,64,32], index: 7, kind: input, shape index: {}]   ;;  %s2987_s9 = inlined_call_operand.vmem [shape: bf16[32,10], index: 9, kind: input, shape index: {}]   ;;  %s2988_s8 = inlined_call_operand.vmem [shape: f32[1,32], index: 8, kind: input, shape index: {}]   ;;  %s2989_s10 = inlined_call_operand.vmem [shape: f32[1,10], index: 10, kind: input, shape index: {}]   ;;  %s2990_s11 = inlined_call_operand.vmem [shape: f32[8,10], index: 11, kind: output, shape index: {}]  }
   0x1   :  { %v2486_v0 = vld [vmem:[%s2979_s1 + $0x8] sm:$0xff]   ;;  %v39_v1 = vld [vmem:[%s2980_s0] sm:$0xff]  ;;  %v41_v3 = vld [vmem:[%s2980_s0 + $0x10] sm:$0xff]  ;;  %vm1789_vm3 = vcmask 261120   ;;  %vm1834_vm4 = vcmask 80896  }
   0x2   :  { %v40_v2 = vld [vmem:[%s2980_s0 + $0x8] sm:$0xff]  ;;  %2117 = vmatprep.subr.bf16.mxu0 %v2486_v0  ;;  %v42_v4 = vld [vmem:[%s2980_s0 + $0x18] sm:$0xff]  ;;  %v2487_v7 = vld [vmem:[%s2979_s1] sm:$0xff]   ;;  %v56_v34 = vpack.c.bf16 %v39_v1, %v2539_v33 }
   0x3   :  { %v66_v5 = vpack.c.bf16 %v40_v2, %v39_v1  ;;  %2118 = vmatpush3.bf16.msra.mxu0 %v2486_v0  ;;  %v67_v6 = vpack.c.bf16 %v42_v4, %v41_v3  ;;  %v43_v8 = vld [vmem:[%s2980_s0 + $0x20] sm:$0xff]  ;;  %v44_v9 = vld [vmem:[%s2980_s0 + $0x28] sm:$0xff]  ;;  %v45_v11 = vld [vmem:[%s2980_s0 + $0x30] sm:$0xff]  ;;  %v57_v35 = vpack.c.bf16 %v41_v3, %v40_v2 }
   0x4   :  { %v68_v10 = vpack.c.bf16 %v44_v9, %v43_v8  ;;  %2135 = vmatprep.subr.bf16.mxu0 %v2487_v7  ;;  %v46_v12 = vld [vmem:[%s2980_s0 + $0x38] sm:$0xff]  ;;  %v47_v13 = vld [vmem:[%s2980_s0 + $0x40] sm:$0xff]  ;;  %v48_v14 = vld [vmem:[%s2980_s0 + $0x48] sm:$0xff]  ;;  %v58_v36 = vpack.c.bf16 %v43_v8, %v42_v4  ;;  %v59_v37 = vpack.c.bf16 %v45_v11, %v44_v9 }
   0x5   :  { %2119 = vmatprep.mubr.msk.bf16.mxu0 %vm83_vm0, %v66_v5  ;;  %v2488_v15 = vld [vmem:[%s2979_s1 + $0x10] sm:$0xff]   ;;  %v2489_v16 = vld [vmem:[%s2981_s3] sm:$0xff]   ;;  %v69_v17 = vpack.c.bf16 %v46_v12, %v45_v11  ;;  %v2490_v18 = vld [vmem:[%s2981_s3 + $0x8] sm:$0xff]   ;;  %v70_v19 = vpack.c.bf16 %v48_v14, %v47_v13  ;;  %v60_v38 = vpack.c.bf16 %v47_v13, %v46_v12 }
   0x6   :  { %2120 = vmatmul.mubr.msk.bf16.vlgmr.msra.gmra.mrb[0].mxu0 %vm83_vm0, %v67_v6  ;;  %2171 = vmatprep.subr.bf16.mxu1 %v2489_v16  ;;  %v2491_v20 = vld [vmem:[%s2981_s3 + $0x10] sm:$0xff]   ;;  %v50_v22 = vld [vmem:[%s2980_s0 + $0x58] sm:$0xff]  ;;  %v51_v23 = vld [vmem:[%s2980_s0 + $0x60] sm:$0xff] }
   0x7   :  { %2136 = vmatpush3.bf16.msra.mxu0 %v2487_v7  ;;  %2123 = vmatprep.mubr.msk.bf16.mxu0 %vm83_vm0, %v68_v10  ;;  %v49_v21 = vld [vmem:[%s2980_s0 + $0x50] sm:$0xff]  ;;  %v52_v24 = vld [vmem:[%s2980_s0 + $0x68] sm:$0xff]  ;;  %v2492_v25 = vld [vmem:[%s2981_s3 + $0x18] sm:$0xff]   ;;  %v62_v40 = vpack.c.bf16 %v51_v23, %v50_v22 }
   0x8   :  { %2153 = vmatprep.subr.bf16.mxu0 %v2488_v15  ;;  %2172 = vmatpush3.bf16.msra.mxu1 %v2489_v16  ;;  %v71_v26 = vpack.c.bf16 %v50_v22, %v49_v21  ;;  %v72_v27 = vpack.c.bf16 %v52_v24, %v51_v23  ;;  %v2493_v28 = vld [vmem:[%s2981_s3 + $0x20] sm:$0xff]   ;;  %v53_v29 = vld [vmem:[%s2980_s0 + $0x70] sm:$0xff]  ;;  %v54_v30 = vld [vmem:[%s2980_s0 + $0x78] sm:$0xff]  ;;  %v61_v39 = vpack.c.bf16 %v49_v21, %v48_v14 }
   0x9   :  { %2173 = vmatprep.subr.bf16.mxu1 %v2490_v18  ;;  %v2494_v31 = vld [vmem:[%s2981_s3 + $0x28] sm:$0xff]   ;;  %v73_v32 = vpack.c.bf16 %v54_v30, %v53_v29  ;;  %v63_v41 = vpack.c.bf16 %v53_v29, %v52_v24  ;;  %v332_v42 = vpack.c.bf16 %v2539_v33, %v54_v30  ;;  %v2495_v43 = vld [vmem:[%s2981_s3 + $0x30] sm:$0xff]   ;;  %v2496_v44 = vld [vmem:[%s2981_s3 + $0x38] sm:$0xff]  }
   0xa   :  { %v1882_v45 = vld [vmem:[%s2982_s2] ss:$0 sm:$0xff] }
   0xc   :  { %2174 = vmatpush3.bf16.msra.mxu1 %v2490_v18 }
   0xd   :  { %2175 = vmatprep.subr.bf16.mxu1 %v2491_v20 }
   0xe   :  { %2124 = vmatmul.mubr.msk.bf16.gmra.mrb[4].mxu0 %vm83_vm0, %v69_v17 }
   0xf   :  { %2127 = vmatprep.mubr.msk.bf16.mxu0 %vm83_vm0, %v70_v19 }
  0x10   :  { %2176 = vmatpush3.bf16.msra.mxu1 %v2491_v20 }
  0x11   :  { %2177 = vmatprep.subr.bf16.mxu1 %v2492_v25 }
  0x14   :  { %2178 = vmatpush3.bf16.msra.mxu1 %v2492_v25 }
  0x15   :  { %2179 = vmatprep.subr.bf16.mxu1 %v2493_v28 }
  0x16   :  { %2128 = vmatmul.mubr.msk.bf16.gmra.mrb[8].mxu0 %vm83_vm0, %v71_v26 }
  0x17   :  { %2131 = vmatprep.mubr.msk.bf16.mxu0 %vm83_vm0, %v72_v27 }
  0x18   :  { %2180 = vmatpush3.bf16.msra.mxu1 %v2493_v28 }
  0x19   :  { %2181 = vmatprep.subr.bf16.mxu1 %v2494_v31 }
  0x1c   :  { %2182 = vmatpush3.bf16.msra.mxu1 %v2494_v31 }
  0x1d   :  { %2183 = vmatprep.subr.bf16.mxu1 %v2495_v43 }
  0x1e   :  { %2132 = vmatmul.mubr.msk.bf16.gmra.mrb[12].mxu0 %vm83_vm0, %v73_v32 }
  0x1f   :  { %2137 = vmatprep.mubr.msk.bf16.mxu0 %vm83_vm0, %v56_v34 }
  0x20   :  { %2184 = vmatpush3.bf16.msra.mxu1 %v2495_v43  ;;  %v2500_v43 = vld [vmem:[%s2983_s4 + $0x38] sm:$0xff]  }
  0x21   :  { %2185 = vmatprep.subr.bf16.mxu1 %v2496_v44 }
  0x24   :  { %2186 = vmatpush3.bf16.msra.mxu1 %v2496_v44 }
  0x26   :  { %2138 = vmatmul.mubr.msk.bf16.vlgmr.msra.gmra.mrb[0].mxu0 %vm83_vm0, %v57_v35 }
  0x27   :  { %2154 = vmatpush3.bf16.msra.mxu0 %v2488_v15  ;;  %2141 = vmatprep.mubr.msk.bf16.mxu0 %vm83_vm0, %v58_v36 }
  0x2e   :  { %2142 = vmatmul.mubr.msk.bf16.gmra.mrb[4].mxu0 %vm83_vm0, %v59_v37 }
  0x2f   :  { %2145 = vmatprep.mubr.msk.bf16.mxu0 %vm83_vm0, %v60_v38 }
  0x36   :  { %2146 = vmatmul.mubr.msk.bf16.gmra.mrb[8].mxu0 %vm83_vm0, %v61_v39 }
  0x37   :  { %2149 = vmatprep.mubr.msk.bf16.mxu0 %vm83_vm0, %v62_v40 }
  0x3e   :  { %2150 = vmatmul.mubr.msk.bf16.gmra.mrb[12].mxu0 %vm83_vm0, %v63_v41 }
  0x3f   :  { %2155 = vmatprep.mubr.msk.bf16.mxu0 %vm83_vm0, %v57_v35 }
  0x46   :  { %2156 = vmatmul.mubr.msk.bf16.vlgmr.msra.gmra.mrb[0].mxu0 %vm83_vm0, %v58_v36 }
  0x47   :  { %2159 = vmatprep.mubr.msk.bf16.mxu0 %vm83_vm0, %v59_v37 }
  0x4e   :  { %2160 = vmatmul.mubr.msk.bf16.gmra.mrb[4].mxu0 %vm83_vm0, %v60_v38 }
  0x4f   :  { %2163 = vmatprep.mubr.msk.bf16.mxu0 %vm83_vm0, %v61_v39  ;;  %v2497_v39 = vld [vmem:[%s2983_s4 + $0x20] sm:$0xff]  }
  0x50   :  { %2203 = vmatprep.subr.bf16.mxu1 %v2497_v39 }
  0x56   :  { %2164 = vmatmul.mubr.msk.bf16.gmra.mrb[8].mxu0 %vm83_vm0, %v62_v40  ;;  %v2498_v40 = vld [vmem:[%s2983_s4 + $0x28] sm:$0xff]  }
  0x57   :  { %2167 = vmatprep.mubr.msk.bf16.mxu0 %vm83_vm0, %v63_v41  ;;  %v2499_v41 = vld [vmem:[%s2983_s4 + $0x30] sm:$0xff]  }
  0x5e   :  { %2168 = vmatmul.mubr.msk.bf16.gmra.mrb[12].mxu0 %vm83_vm0, %v332_v42 }
 0x119   :  { %v2157_v46 = vpop.f32.mrb[0].mxu0 }
 0x11a   :  { %v466_v47 = vadd.f32 %v2157_v46, %v1882_v45  ;;  %v379_v48 = vpop.f32.mrb[1].mxu0 }
 0x11b   :  { %v464_v49 = vadd.f32 %v1882_v45, %v379_v48  ;;  %v2158_v50 = vpop.f32.mrb[2].mxu0 }
 0x11c   :  { %v467_v51 = vadd.f32 %v2158_v50, %v1882_v45  ;;  %v382_v52 = vpop.f32.mrb[3].mxu0  ;;  %v482_v54 = vmax.f32 %v466_v47, 0.0 }
 0x11d   :  { %v465_v53 = vadd.f32 %v1882_v45, %v382_v52  ;;  %v480_v56 = vmax.f32 %v464_v49, 0.0 }
 0x11e   :  { %v483_v55 = vmax.f32 %v467_v51, 0.0 }
 0x11f   :  { %v481_v57 = vmax.f32 %v465_v53, 0.0  ;;  %v2743_v53 = vld [vmem:[%s2983_s4] sm:$0xff]  }
 0x120   :  { %v497_v58 = vpack.c.bf16 %v483_v55, %v482_v54 }
 0x121   :  { %v2161_v59 = vpop.f32.mrb[4].mxu0  ;;  %v496_v60 = vpack.c.bf16 %v481_v57, %v480_v56 }
 0x122   :  { %v470_v61 = vadd.f32 %v2161_v59, %v1882_v45  ;;  %v395_v62 = vpop.f32.mrb[5].mxu0 }
 0x123   :  { %v468_v63 = vadd.f32 %v1882_v45, %v395_v62  ;;  %v2162_v0 = vpop.f32.mrb[6].mxu0  ;;  %2187 = vmatprep.mubr.bf16.mxu1 %v496_v60 }
 0x124   :  { %v471_v1 = vadd.f32 %v2162_v0, %v1882_v45  ;;  %v398_v2 = vpop.f32.mrb[7].mxu0  ;;  %2188 = vmatmul.mubr.bf16.vlgmr.msra.gmra.mrb[0].mxu1 %v497_v58  ;;  %v486_v4 = vmax.f32 %v470_v61, 0.0 }
 0x125   :  { %v469_v3 = vadd.f32 %v1882_v45, %v398_v2  ;;  %v484_v6 = vmax.f32 %v468_v63, 0.0  ;;  %2204 = vmatpush3.bf16.msra.mxu1 %v2497_v39 }
 0x126   :  { %v487_v5 = vmax.f32 %v471_v1, 0.0  ;;  %2205 = vmatprep.subr.bf16.mxu1 %v2498_v40 }
 0x127   :  { %v485_v7 = vmax.f32 %v469_v3, 0.0  ;;  %v2509_v3 = vld [vmem:[%s2984_s6] sm:$0xff]  }
 0x128   :  { %v499_v8 = vpack.c.bf16 %v487_v5, %v486_v4  ;;  %v2510_v4 = vld [vmem:[%s2984_s6 + $0x8] sm:$0xff]   ;;  %2275 = vmatprep.subr.bf16.mxu0 %v2509_v3  ;;  %v2511_v5 = vld [vmem:[%s2984_s6 + $0x10] sm:$0xff]  }
 0x129   :  { %v498_v9 = vpack.c.bf16 %v485_v7, %v484_v6  ;;  %v2165_v10 = vpop.f32.mrb[8].mxu0  ;;  %2206 = vmatpush3.bf16.msra.mxu1 %v2498_v40  ;;  %2276 = vmatpush3.bf16.msra.mxu0 %v2509_v3  ;;  %v2512_v6 = vld [vmem:[%s2984_s6 + $0x18] sm:$0xff]   ;;  %v2513_v7 = vld [vmem:[%s2984_s6 + $0x20] sm:$0xff]  }
 0x12a   :  { %v474_v11 = vadd.f32 %v2165_v10, %v1882_v45  ;;  %v411_v12 = vpop.f32.mrb[9].mxu0  ;;  %2207 = vmatprep.subr.bf16.mxu1 %v2499_v41  ;;  %2277 = vmatprep.subr.bf16.mxu0 %v2510_v4 }
 0x12b   :  { %v472_v13 = vadd.f32 %v1882_v45, %v411_v12  ;;  %v2166_v14 = vpop.f32.mrb[10].mxu0  ;;  %2191 = vmatprep.mubr.bf16.mxu1 %v498_v9 }
 0x12c   :  { %v475_v15 = vadd.f32 %v2166_v14, %v1882_v45  ;;  %v414_v16 = vpop.f32.mrb[11].mxu0  ;;  %2192 = vmatmul.mubr.bf16.gmra.mrb[4].mxu1 %v499_v8  ;;  %v490_v18 = vmax.f32 %v474_v11, 0.0  ;;  %v2514_v8 = vld [vmem:[%s2984_s6 + $0x28] sm:$0xff]  }
 0x12d   :  { %v473_v17 = vadd.f32 %v1882_v45, %v414_v16  ;;  %v488_v20 = vmax.f32 %v472_v13, 0.0  ;;  %2208 = vmatpush3.bf16.msra.mxu1 %v2499_v41  ;;  %2278 = vmatpush3.bf16.msra.mxu0 %v2510_v4  ;;  %v2503_v41 = vld [vmem:[%s2983_s4 + $0x10] sm:$0xff]   ;;  %v2505_v4 = vld [vmem:[%s2983_s4 + $0x40] sm:$0xff]  }
 0x12e   :  { %v491_v19 = vmax.f32 %v475_v15, 0.0  ;;  %2209 = vmatprep.subr.bf16.mxu1 %v2500_v43  ;;  %2279 = vmatprep.subr.bf16.mxu0 %v2511_v5 }
 0x12f   :  { %v489_v21 = vmax.f32 %v473_v17, 0.0 }
 0x130   :  { %v501_v22 = vpack.c.bf16 %v491_v19, %v490_v18 }
 0x131   :  { %v500_v23 = vpack.c.bf16 %v489_v21, %v488_v20  ;;  %v2169_v24 = vpop.f32.mrb[12].mxu0  ;;  %2210 = vmatpush3.bf16.msra.mxu1 %v2500_v43  ;;  %2280 = vmatpush3.bf16.msra.mxu0 %v2511_v5 }
 0x132   :  { %v478_v25 = vadd.f32 %v2169_v24, %v1882_v45  ;;  %v427_v26 = vpop.f32.mrb[13].mxu0  ;;  %2227 = vmatprep.subr.bf16.mxu1 %v2743_v53  ;;  %2281 = vmatprep.subr.bf16.mxu0 %v2512_v6 }
 0x133   :  { %v476_v27 = vadd.f32 %v1882_v45, %v427_v26  ;;  %v2170_v28 = vpop.f32.mrb[14].mxu0  ;;  %2195 = vmatprep.mubr.bf16.mxu1 %v500_v23 }
 0x134   :  { %v479_v29 = vadd.f32 %v2170_v28, %v1882_v45  ;;  %v430_v30 = vpop.f32.mrb[15].mxu0  ;;  %2196 = vmatmul.mubr.bf16.gmra.mrb[8].mxu1 %v501_v22  ;;  %v494_v32 = vmax.f32 %v478_v25, 0.0 }
 0x135   :  { %v477_v31 = vadd.f32 %v1882_v45, %v430_v30  ;;  %v492_v35 = vmax.f32 %v476_v27, 0.0  ;;  %2282 = vmatpush3.bf16.msra.mxu0 %v2512_v6 }
 0x136   :  { %v495_v34 = vmax.f32 %v479_v29, 0.0  ;;  %2283 = vmatprep.subr.bf16.mxu0 %v2513_v7 }
 0x137   :  { %v493_v36 = vmax.f32 %v477_v31, 0.0 }
 0x138   :  { %v503_v37 = vpack.c.bf16 %v495_v34, %v494_v32  ;;  %v2502_v32 = vld [vmem:[%s2983_s4 + $0x8] sm:$0xff]  }
 0x139   :  { %v502_v38 = vpack.c.bf16 %v493_v36, %v492_v35  ;;  %2284 = vmatpush3.bf16.msra.mxu0 %v2513_v7 }
 0x13a   :  { %2285 = vmatprep.subr.bf16.mxu0 %v2514_v8 }
 0x13b   :  { %2199 = vmatprep.mubr.bf16.mxu1 %v502_v38 }
 0x13c   :  { %2200 = vmatmul.mubr.bf16.gmra.mrb[12].mxu1 %v503_v37 }
 0x13d   :  { %2286 = vmatpush3.bf16.msra.mxu0 %v2514_v8 }
 0x1f7   :  { %v2722_v42 = vpop.f32.mrb[0].mxu1 }
 0x1f8   :  { %v602_v44 = vpop.f32.mrb[1].mxu1 }
 0x1f9   :  { %v2727_v45 = vpop.f32.mrb[2].mxu1 }
 0x1fa   :  { %v2436_v46 = vpack.i.bf16 %v2727_v45, %v2722_v42  ;;  %v605_v47 = vpop.f32.mrb[3].mxu1 }
 0x1fb   :  { %v2431_v48 = vpack.i.bf16 %v605_v47, %v602_v44 }
 0x1fd   :  { %2432 = vrot.lane.b32.xlu0 %v2431_v48, %s2540_s19 }
 0x1ff   :  { %v2732_v49 = vpop.f32.mrb[4].mxu1 }
 0x200   :  { %v618_v50 = vpop.f32.mrb[5].mxu1 }
 0x201   :  { %2437 = vrot.lane.b32.xlu0 %v2436_v46, %s2540_s19  ;;  %689 = vrot.lane.b32.xlu1 %v618_v50, %s2540_s19  ;;  %v2736_v51 = vpop.f32.mrb[6].mxu1 }
 0x202   :  { %v2738_v52 = vpop.f32.mrb[7].mxu1 }
 0x203   :  { %v2441_v54 = vpack.i.bf16 %v2732_v49, %v2738_v52 }
 0x205   :  { %2442 = vrot.lane.b32.xlu1 %v2441_v54, %s2540_s19 }
 0x207   :  { %v2749_v55 = vpop.f32.mrb[8].mxu1 }
 0x208   :  { %v2751_v56 = vpop.f32.mrb[9].mxu1 }
 0x209   :  { %v2446_v57 = vpack.i.bf16 %v2751_v56, %v2736_v51  ;;  %v2755_v58 = vpop.f32.mrb[10].mxu1 }
 0x20a   :  { %v2757_v59 = vpop.f32.mrb[11].mxu1 }
 0x20b   :  { %v2451_v60 = vpack.i.bf16 %v2749_v55, %v2757_v59  ;;  %2447 = vrot.lane.b32.xlu0 %v2446_v57, %s2540_s19 }
 0x20d   :  { %2452 = vrot.lane.b32.xlu1 %v2451_v60, %s2540_s19 }
 0x20f   :  { %v2763_v61 = vpop.f32.mrb[12].mxu1 }
 0x210   :  { %v2765_v62 = vpop.f32.mrb[13].mxu1 }
 0x211   :  { %v2456_v63 = vpack.i.bf16 %v2765_v62, %v2755_v58  ;;  %v2769_v0 = vpop.f32.mrb[14].mxu1 }
 0x212   :  { %v2771_v1 = vpop.f32.mrb[15].mxu1 }
 0x213   :  { %v2461_v2 = vpack.i.bf16 %v2763_v61, %v2771_v1  ;;  %2457 = vrot.lane.b32.xlu0 %v2456_v63, %s2540_s19 }
 0x215   :  { %2462 = vrot.lane.b32.xlu1 %v2461_v2, %s2540_s19 }
 0x217   :  { %711 = vrot.lane.b32.xlu0 %v2769_v0, %s2540_s19 }
 0x26f   :  { %v2433_v9 = vpop.permute.xlu0 %2432 }
 0x270   :  { %v2435_v10 = vunpack.i.h.bf16 %v2433_v9  ;;  %v2434_v11 = vunpack.i.l.bf16 %v2433_v9 }
 0x272   :  { %v730_v12 = vmax.f32 %v605_v47, %v2435_v10  ;;  %v729_v13 = vmax.f32 %v602_v44, %v2434_v11 }
 0x273   :  { %v2438_v14 = vpop.permute.xlu0 %2437  ;;  %v690_v15 = vpop.permute.xlu1 %689 }
 0x274   :  { %v745_v16 = vmax.f32 %v729_v13, %v730_v12  ;;  %v2440_v17 = vunpack.i.h.bf16 %v2438_v14  ;;  %v2439_v18 = vunpack.i.l.bf16 %v2438_v14  ;;  %v733_v21 = vmax.f32 %v618_v50, %v690_v15 }
 0x276   :  { %v732_v19 = vmax.f32 %v2727_v45, %v2440_v17  ;;  %v731_v20 = vmax.f32 %v2722_v42, %v2439_v18  ;;  %v2515_v17 = vld [vmem:[%s2984_s6 + $0x30] sm:$0xff]   ;;  %v2516_v18 = vld [vmem:[%s2984_s6 + $0x38] sm:$0xff]  }
 0x277   :  { %v2443_v22 = vpop.permute.xlu1 %2442  ;;  %2287 = vmatprep.subr.bf16.mxu0 %v2515_v17 }
 0x278   :  { %v746_v23 = vmax.f32 %v730_v12, %v731_v20  ;;  %v747_v24 = vmax.f32 %v731_v20, %v732_v19  ;;  %v748_v25 = vmax.f32 %v732_v19, %v733_v21  ;;  %v2445_v26 = vunpack.i.h.bf16 %v2443_v22  ;;  %2288 = vmatpush3.bf16.msra.mxu0 %v2515_v17  ;;  %v1941_v19 = vld [vmem:[%s2985_s5] ss:$0 sm:$0xff] }
 0x279   :  { %v2444_v27 = vunpack.i.l.bf16 %v2443_v22  ;;  %2289 = vmatprep.subr.bf16.mxu0 %v2516_v18 }
 0x27a   :  { %v2799_v28 = vpack.c.bf16 %v748_v25, %v747_v24  ;;  %v735_v29 = vmax.f32 %v2732_v49, %v2445_v26  ;;  %v2802_v30 = vpack.c.bf16 %v746_v23, %v745_v16  ;;  %v2508_v16 = vld [vmem:[%s2983_s4 + $0x58] sm:$0xff]  }
 0x27b   :  { %v734_v31 = vmax.f32 %v2738_v52, %v2444_v27 }
 0x27c   :  { %2211 = vmatprep.mubr.msk.bf16.mxu1 %vm812_vm1, %v2802_v30  ;;  %2290 = vmatpush3.bf16.msra.mxu0 %v2516_v18 }
 0x27d   :  { %v749_v34 = vmax.f32 %v733_v21, %v734_v31  ;;  %v750_v35 = vmax.f32 %v734_v31, %v735_v29  ;;  %v2448_v36 = vpop.permute.xlu0 %2447  ;;  %2212 = vmatmul.mubr.msk.bf16.vlgmr.msra.gmra.mrb[16].mxu1 %vm812_vm1, %v2799_v28  ;;  %2307 = vmatprep.subr.bf16.mxu0 %v2539_v33 }
 0x27e   :  { %v2450_v37 = vunpack.i.h.bf16 %v2448_v36  ;;  %v2449_v38 = vunpack.i.l.bf16 %v2448_v36  ;;  %2228 = vmatpush3.bf16.msra.mxu1 %v2743_v53 }
 0x27f   :  { %v2453_v39 = vpop.permute.xlu1 %2452  ;;  %v2813_v40 = vpack.c.bf16 %v750_v35, %v749_v34  ;;  %2229 = vmatprep.subr.bf16.mxu1 %v2502_v32 }
 0x280   :  { %v737_v42 = vmax.f32 %v2751_v56, %v2450_v37  ;;  %v736_v43 = vmax.f32 %v2736_v51, %v2449_v38  ;;  %v2455_v44 = vunpack.i.h.bf16 %v2453_v39  ;;  %v2454_v45 = vunpack.i.l.bf16 %v2453_v39  ;;  %v2504_v51 = vld [vmem:[%s2983_s4 + $0x18] sm:$0xff]  }
 0x281   :  { %2215 = vmatprep.mubr.msk.bf16.mxu1 %vm812_vm1, %v2813_v40 }
 0x282   :  { %v751_v46 = vmax.f32 %v735_v29, %v736_v43  ;;  %v752_v47 = vmax.f32 %v736_v43, %v737_v42  ;;  %v739_v48 = vmax.f32 %v2749_v55, %v2455_v44  ;;  %v738_v49 = vmax.f32 %v2757_v59, %v2454_v45  ;;  %2230 = vmatpush3.bf16.msra.mxu1 %v2502_v32 }
 0x283   :  { %2231 = vmatprep.subr.bf16.mxu1 %v2503_v41 }
 0x284   :  { %v753_v50 = vmax.f32 %v737_v42, %v738_v49  ;;  %v754_v52 = vmax.f32 %v738_v49, %v739_v48  ;;  %v766_v53 = vpack.c.bf16 %v752_v47, %v751_v46 }
 0x285   :  { %v2458_v54 = vpop.permute.xlu0 %2457 }
 0x286   :  { %v2460_v56 = vunpack.i.h.bf16 %v2458_v54  ;;  %v2459_v57 = vunpack.i.l.bf16 %v2458_v54  ;;  %2216 = vmatmul.mubr.msk.bf16.gmra.mrb[20].mxu1 %vm812_vm1, %v766_v53  ;;  %v767_v60 = vpack.c.bf16 %v754_v52, %v753_v50 }
 0x287   :  { %v2463_v63 = vpop.permute.xlu1 %2462  ;;  %2232 = vmatpush3.bf16.msra.mxu1 %v2503_v41 }
 0x288   :  { %v741_v55 = vmax.f32 %v2765_v62, %v2460_v56  ;;  %v740_v59 = vmax.f32 %v2755_v58, %v2459_v57  ;;  %v2465_v2 = vunpack.i.h.bf16 %v2463_v63  ;;  %v2464_v3 = vunpack.i.l.bf16 %v2463_v63  ;;  %2219 = vmatprep.mubr.msk.bf16.mxu1 %vm812_vm1, %v767_v60  ;;  %2233 = vmatprep.subr.bf16.mxu1 %v2504_v51 }
 0x289   :  { %v712_v5 = vpop.permute.xlu0 %711 }
 0x28a   :  { %v755_v6 = vmax.f32 %v739_v48, %v740_v59  ;;  %v756_v7 = vmax.f32 %v740_v59, %v741_v55  ;;  %v743_v8 = vmax.f32 %v2763_v61, %v2465_v2  ;;  %v742_v9 = vmax.f32 %v2771_v1, %v2464_v3  ;;  %v2507_v1 = vld [vmem:[%s2983_s4 + $0x50] sm:$0xff]  }
 0x28b   :  { %v744_v62 = vmax.f32 %v2769_v0, %v712_v5  ;;  %2234 = vmatpush3.bf16.msra.mxu1 %v2504_v51  ;;  %v2541_v61 = vmov 0.0|0.0   ;;  %v2506_v0 = vld [vmem:[%s2983_s4 + $0x48] sm:$0xff]  }
 0x28c   :  { %v757_v58 = vmax.f32 %v741_v55, %v742_v9  ;;  %v758_v10 = vmax.f32 %v742_v9, %v743_v8  ;;  %v768_v11 = vpack.c.bf16 %v756_v7, %v755_v6  ;;  %2251 = vmatprep.subr.bf16.mxu1 %v2505_v4 }
 0x28d   :  { %v759_v12 = vmax.f32 %v743_v8, %v744_v62  ;;  %v760_v13 = vmax.f32 %v744_v62, 0.0 }
 0x28e   :  { %2220 = vmatmul.mubr.msk.bf16.gmra.mrb[24].mxu1 %vm812_vm1, %v768_v11  ;;  %v769_v14 = vpack.c.bf16 %v758_v10, %v757_v58 }
 0x28f   :  { %v778_v15 = vpack.c.bf16 %v760_v13, %v759_v12 }
 0x290   :  { %2223 = vmatprep.mubr.msk.bf16.mxu1 %vm812_vm1, %v769_v14 }
 0x296   :  { %2224 = vmatmul.mubr.msk.bf16.gmra.mrb[28].mxu1 %vm812_vm1, %v778_v15 }
 0x297   :  { %2235 = vmatprep.mubr.bf16.mxu1 %v2541_v61 }
 0x29e   :  { %2236 = vmatmul.mubr.msk.bf16.vlgmr.msra.gmra.mrb[16].mxu1 %vm812_vm1, %v2802_v30 }
 0x29f   :  { %2239 = vmatprep.mubr.msk.bf16.mxu1 %vm812_vm1, %v2799_v28  ;;  %2252 = vmatpush3.bf16.msra.mxu1 %v2505_v4 }
 0x2a0   :  { %2253 = vmatprep.subr.bf16.mxu1 %v2506_v0 }
 0x2a3   :  { %2254 = vmatpush3.bf16.msra.mxu1 %v2506_v0  ;;  %v2518_v0 = vld [vmem:[%s2986_s7 + $0x28] sm:$0xff]  }
 0x2a4   :  { %2255 = vmatprep.subr.bf16.mxu1 %v2507_v1 }
 0x2a6   :  { %2240 = vmatmul.mubr.msk.bf16.gmra.mrb[20].mxu1 %vm812_vm1, %v2813_v40 }
 0x2a7   :  { %2243 = vmatprep.mubr.msk.bf16.mxu1 %vm812_vm1, %v766_v53  ;;  %2256 = vmatpush3.bf16.msra.mxu1 %v2507_v1  ;;  %v2519_v1 = vld [vmem:[%s2986_s7 + $0x30] sm:$0xff]  }
 0x2a8   :  { %2257 = vmatprep.subr.bf16.mxu1 %v2508_v16 }
 0x2ab   :  { %2258 = vmatpush3.bf16.msra.mxu1 %v2508_v16  ;;  %v2521_v16 = vld [vmem:[%s2986_s7 + $0x40] sm:$0xff]  }
 0x2ac   :  { %2331 = vmatprep.subr.bf16.mxu1 %v2539_v33 }
 0x2ae   :  { %2244 = vmatmul.mubr.msk.bf16.gmra.mrb[24].mxu1 %vm812_vm1, %v767_v60 }
 0x2af   :  { %2247 = vmatprep.mubr.msk.bf16.mxu1 %vm812_vm1, %v768_v11 }
 0x2b6   :  { %2248 = vmatmul.mubr.msk.bf16.gmra.mrb[28].mxu1 %vm812_vm1, %v769_v14 }
 0x2b7   :  { %2259 = vmatprep.mubr.msk.bf16.mxu1 %vm812_vm1, %v2799_v28 }
 0x2be   :  { %2260 = vmatmul.mubr.msk.bf16.vlgmr.msra.gmra.mrb[16].mxu1 %vm812_vm1, %v2813_v40 }
 0x2bf   :  { %2263 = vmatprep.mubr.msk.bf16.mxu1 %vm812_vm1, %v766_v53  ;;  %2332 = vmatpush3.bf16.msra.mxu1 %v2521_v16 }
 0x2c0   :  { %2333 = vmatprep.subr.bf16.mxu1 %v2539_v33 }
 0x2c6   :  { %2264 = vmatmul.mubr.msk.bf16.gmra.mrb[20].mxu1 %vm812_vm1, %v767_v60 }
 0x2c7   :  { %2267 = vmatprep.mubr.msk.bf16.mxu1 %vm812_vm1, %v768_v11 }
 0x2ce   :  { %2268 = vmatmul.mubr.msk.bf16.gmra.mrb[24].mxu1 %vm812_vm1, %v769_v14 }
 0x2cf   :  { %2271 = vmatprep.mubr.msk.bf16.mxu1 %vm812_vm1, %v778_v15 }
 0x2d6   :  { %2272 = vmatmul.mubr.bf16.gmra.mrb[28].mxu1 %v2541_v61  ;;  %v2517_v61 = vld [vmem:[%s2986_s7 + $0x20] sm:$0xff]  }
 0x2d7   :  { %2339 = vmatprep.mubr.msk.bf16.mxu1 %vm2542_vm2, %v2539_v33 }
 0x391   :  { %v2261_v20 = vpop.f32.mrb[16].mxu1 }
 0x392   :  { %v1212_v21 = vadd.f32 %v2261_v20, %v1941_v19  ;;  %v1125_v22 = vpop.f32.mrb[17].mxu1 }
 0x393   :  { %v1210_v23 = vadd.f32 %v1941_v19, %v1125_v22  ;;  %v2262_v24 = vpop.f32.mrb[18].mxu1 }
 0x394   :  { %v1213_v25 = vadd.f32 %v2262_v24, %v1941_v19  ;;  %v1128_v26 = vpop.f32.mrb[19].mxu1  ;;  %v1228_v28 = vmax.f32 %v1212_v21, 0.0  ;;  %v2520_v21 = vld [vmem:[%s2986_s7 + $0x38] sm:$0xff]   ;;  %v2524_v24 = vld [vmem:[%s2986_s7 + $0x50] sm:$0xff]  }
 0x395   :  { %v1211_v27 = vadd.f32 %v1941_v19, %v1128_v26  ;;  %v1226_v30 = vmax.f32 %v1210_v23, 0.0  ;;  %v2522_v23 = vld [vmem:[%s2986_s7 + $0x48] sm:$0xff]  }
 0x396   :  { %v1229_v29 = vmax.f32 %v1213_v25, 0.0  ;;  %2334 = vmatpush3.bf16.msra.mxu1 %v2522_v23 }
 0x397   :  { %v1227_v31 = vmax.f32 %v1211_v27, 0.0  ;;  %2335 = vmatprep.subr.bf16.mxu1 %v2539_v33 }
 0x398   :  { %v1243_v32 = vpack.c.bf16 %v1229_v29, %v1228_v28 }
 0x399   :  { %v1242_v34 = vpack.c.bf16 %v1227_v31, %v1226_v30  ;;  %v2265_v35 = vpop.f32.mrb[20].mxu1  ;;  %v2526_v30 = vld [vmem:[%s2986_s7 + $0x58] sm:$0xff]  }
 0x39a   :  { %v1216_v36 = vadd.f32 %v2265_v35, %v1941_v19  ;;  %v1141_v37 = vpop.f32.mrb[21].mxu1  ;;  %2336 = vmatpush3.bf16.msra.mxu1 %v2524_v24 }
 0x39b   :  { %v1214_v38 = vadd.f32 %v1941_v19, %v1141_v37  ;;  %v2266_v39 = vpop.f32.mrb[22].mxu1  ;;  %2291 = vmatprep.mubr.bf16.mxu0 %v1242_v34  ;;  %2337 = vmatprep.subr.bf16.mxu1 %v2539_v33 }
 0x39c   :  { %v1217_v40 = vadd.f32 %v2266_v39, %v1941_v19  ;;  %v1144_v41 = vpop.f32.mrb[23].mxu1  ;;  %2292 = vmatmul.mubr.bf16.vlgmr.msra.gmra.mrb[16].mxu0 %v1243_v32  ;;  %v1232_v43 = vmax.f32 %v1216_v36, 0.0 }
 0x39d   :  { %v1215_v42 = vadd.f32 %v1941_v19, %v1144_v41  ;;  %v1230_v45 = vmax.f32 %v1214_v38, 0.0  ;;  %2308 = vmatpush3.bf16.msra.mxu0 %v2517_v61 }
 0x39e   :  { %v1233_v44 = vmax.f32 %v1217_v40, 0.0  ;;  %2309 = vmatprep.subr.bf16.mxu0 %v2539_v33  ;;  %2338 = vmatpush3.bf16.msra.mxu1 %v2526_v30  ;;  %v1994_v30 = vld [vmem:[%s2988_s8] ss:$0 sm:$0xff] }
 0x39f   :  { %v1231_v46 = vmax.f32 %v1215_v42, 0.0  ;;  %2355 = vmatprep.subr.bf16.mxu1 %v2539_v33 }
 0x3a0   :  { %v1245_v47 = vpack.c.bf16 %v1233_v44, %v1232_v43 }
 0x3a1   :  { %v1244_v48 = vpack.c.bf16 %v1231_v46, %v1230_v45  ;;  %v2269_v49 = vpop.f32.mrb[24].mxu1  ;;  %2310 = vmatpush3.bf16.msra.mxu0 %v2518_v0  ;;  %v2533_v0 = vld [vmem:[%s2987_s9] sm:$0xff]  }
 0x3a2   :  { %v1220_v50 = vadd.f32 %v2269_v49, %v1941_v19  ;;  %v1157_v52 = vpop.f32.mrb[25].mxu1  ;;  %2311 = vmatprep.subr.bf16.mxu0 %v2539_v33 }
 0x3a3   :  { %v1218_v53 = vadd.f32 %v1941_v19, %v1157_v52  ;;  %v2270_v51 = vpop.f32.mrb[26].mxu1  ;;  %2295 = vmatprep.mubr.bf16.mxu0 %v1244_v48 }
 0x3a4   :  { %v1221_v54 = vadd.f32 %v2270_v51, %v1941_v19  ;;  %v1160_v56 = vpop.f32.mrb[27].mxu1  ;;  %2296 = vmatmul.mubr.bf16.gmra.mrb[20].mxu0 %v1245_v47  ;;  %v1236_v60 = vmax.f32 %v1220_v50, 0.0 }
 0x3a5   :  { %v1219_v57 = vadd.f32 %v1941_v19, %v1160_v56  ;;  %v1234_v55 = vmax.f32 %v1218_v53, 0.0  ;;  %2312 = vmatpush3.bf16.msra.mxu0 %v2519_v1  ;;  %v2534_v1 = vld [vmem:[%s2987_s9 + $0x8] sm:$0xff]  }
 0x3a6   :  { %v1237_v63 = vmax.f32 %v1221_v54, 0.0  ;;  %2313 = vmatprep.subr.bf16.mxu0 %v2539_v33  ;;  %v2523_v54 = vld [vmem:[%s2986_s7] sm:$0xff]  }
 0x3a7   :  { %v1235_v59 = vmax.f32 %v1219_v57, 0.0 }
 0x3a8   :  { %v1247_v2 = vpack.c.bf16 %v1237_v63, %v1236_v60 }
 0x3a9   :  { %v1246_v3 = vpack.c.bf16 %v1235_v59, %v1234_v55  ;;  %v2273_v4 = vpop.f32.mrb[28].mxu1  ;;  %2314 = vmatpush3.bf16.msra.mxu0 %v2520_v21  ;;  %v2525_v55 = vld [vmem:[%s2986_s7 + $0x8] sm:$0xff]  }
 0x3aa   :  { %v1224_v5 = vadd.f32 %v2273_v4, %v1941_v19  ;;  %v1173_v6 = vpop.f32.mrb[29].mxu1  ;;  %2319 = vmatprep.subr.bf16.mxu0 %v2539_v33  ;;  %v2527_v4 = vld [vmem:[%s2986_s7 + $0x10] sm:$0xff]  }
 0x3ab   :  { %v1222_v7 = vadd.f32 %v1941_v19, %v1173_v6  ;;  %v2274_v8 = vpop.f32.mrb[30].mxu1  ;;  %2299 = vmatprep.mubr.bf16.mxu0 %v1246_v3 }
 0x3ac   :  { %v1225_v9 = vadd.f32 %v2274_v8, %v1941_v19  ;;  %v1176_v62 = vpop.f32.mrb[31].mxu1  ;;  %2300 = vmatmul.mubr.bf16.gmra.mrb[24].mxu0 %v1247_v2  ;;  %v1240_v10 = vmax.f32 %v1224_v5, 0.0 }
 0x3ad   :  { %v1223_v58 = vadd.f32 %v1941_v19, %v1176_v62  ;;  %v1238_v12 = vmax.f32 %v1222_v7, 0.0 }
 0x3ae   :  { %v1241_v11 = vmax.f32 %v1225_v9, 0.0  ;;  %v2528_v9 = vld [vmem:[%s2986_s7 + $0x18] sm:$0xff]  }
 0x3af   :  { %v1239_v13 = vmax.f32 %v1223_v58, 0.0 }
 0x3b0   :  { %v1249_v14 = vpack.c.bf16 %v1241_v11, %v1240_v10  ;;  %v2529_v11 = vld [vmem:[%s2986_s7 + $0x60] sm:$0xff]  }
 0x3b1   :  { %v1248_v15 = vpack.c.bf16 %v1239_v13, %v1238_v12  ;;  %v2530_v13 = vld [vmem:[%s2986_s7 + $0x68] sm:$0xff]  }
 0x3b3   :  { %2303 = vmatprep.mubr.bf16.mxu0 %v1248_v15  ;;  %v2532_v15 = vld [vmem:[%s2986_s7 + $0x78] sm:$0xff]  }
 0x3b4   :  { %2304 = vmatmul.mubr.bf16.gmra.mrb[28].mxu0 %v1249_v14  ;;  %v2531_v14 = vld [vmem:[%s2986_s7 + $0x70] sm:$0xff]  }
 0x3b5   :  { %2315 = vmatprep.mubr.msk.bf16.mxu0 %vm2542_vm2, %v2539_v33 }
 0x46f   :  { %v2293_v17 = vpop.f32.mrb[16].mxu0 }
 0x470   :  { %v1348_v18 = vpop.f32.mrb[17].mxu0 }
 0x471   :  { %v2471_v19 = vpack.i.bf16 %v2293_v17, %v1348_v18  ;;  %v2294_v20 = vpop.f32.mrb[18].mxu0 }
 0x472   :  { %v1351_v22 = vpop.f32.mrb[19].mxu0 }
 0x473   :  { %2472 = vrot.lane.b32.xlu0 %v2471_v19, %s2540_s19 }
 0x477   :  { %v2297_v25 = vpop.f32.mrb[20].mxu0 }
 0x478   :  { %v1362_v26 = vpop.f32.mrb[21].mxu0 }
 0x479   :  { %v2466_v27 = vpack.i.bf16 %v2297_v25, %v1362_v26  ;;  %v2298_v28 = vpop.f32.mrb[22].mxu0 }
 0x47a   :  { %v1365_v29 = vpop.f32.mrb[23].mxu0 }
 0x47b   :  { %2467 = vrot.lane.b32.xlu1 %v2466_v27, %s2540_s19 }
 0x47f   :  { %v2301_v31 = vpop.f32.mrb[24].mxu0 }
 0x480   :  { %v1376_v32 = vpop.f32.mrb[25].mxu0 }
 0x481   :  { %v2476_v34 = vpack.i.bf16 %v2301_v31, %v1376_v32  ;;  %v2302_v35 = vpop.f32.mrb[26].mxu0 }
 0x482   :  { %v1379_v36 = vpop.f32.mrb[27].mxu0 }
 0x483   :  { %2477 = vrot.lane.b32.xlu1 %v2476_v34, %s2540_s19 }
 0x487   :  { %v2305_v37 = vpop.f32.mrb[28].mxu0 }
 0x488   :  { %v1390_v38 = vpop.f32.mrb[29].mxu0 }
 0x489   :  { %v2481_v39 = vpack.i.bf16 %v2305_v37, %v1390_v38  ;;  %v2306_v40 = vpop.f32.mrb[30].mxu0 }
 0x48a   :  { %v1393_v41 = vpop.f32.mrb[31].mxu0 }
 0x48b   :  { %2482 = vrot.lane.b32.xlu0 %v2481_v39, %s2540_s19  ;;  %v1995_v39 = vld [vmem:[%s2989_s10] ss:$0 sm:$0xff] }
 0x4e5   :  { %v2473_v42 = vpop.permute.xlu0 %2472 }
 0x4e6   :  { %v2475_v43 = vunpack.i.h.bf16 %v2473_v42  ;;  %v2474_v44 = vunpack.i.l.bf16 %v2473_v42 }
 0x4e8   :  { %v1436_v45 = vmax.f32 %v2293_v17, %v2475_v43  ;;  %v1435_v46 = vmax.f32 %v1348_v18, %v2474_v44 }
 0x4ea   :  { %v1443_v47 = vmax.f32 %v1435_v46, %v1436_v45 }
 0x4ec   :  { %v1447_v12 = vpack.c.bf16 %v1443_v47, %v1443_v47 }
 0x4ed   :  { %v2468_v48 = vpop.permute.xlu1 %2467 }
 0x4ee   :  { %v2470_v49 = vunpack.i.h.bf16 %v2468_v48  ;;  %v2469_v50 = vunpack.i.l.bf16 %v2468_v48 }
 0x4f0   :  { %v1438_v52 = vmax.f32 %v2297_v25, %v2470_v49  ;;  %v1437_v53 = vmax.f32 %v1362_v26, %v2469_v50 }
 0x4f2   :  { %v1444_v51 = vmax.f32 %v1437_v53, %v1438_v52 }
 0x4f4   :  { %v1456_v56 = vpack.c.bf16 %v1444_v51, %v1444_v51 }
 0x4f5   :  { %v2478_v57 = vpop.permute.xlu1 %2477 }
 0x4f6   :  { %v2480_v60 = vunpack.i.h.bf16 %v2478_v57  ;;  %v2479_v63 = vunpack.i.l.bf16 %v2478_v57  ;;  %2316 = vmatmul.mubr.msk.bf16.vlgmr.msra.gmra.mrb[32].mxu0 %vm812_vm1, %v1456_v56 }
 0x4f7   :  { %2320 = vmatpush3.bf16.msra.mxu0 %v2523_v54  ;;  %2327 = vmatprep.mubr.msk.bf16.mxu0 %vm2542_vm2, %v2539_v33 }
 0x4f8   :  { %v1440_v59 = vmax.f32 %v2301_v31, %v2480_v60  ;;  %v1439_v2 = vmax.f32 %v1376_v32, %v2479_v63  ;;  %2321 = vmatprep.subr.bf16.mxu0 %v2539_v33 }
 0x4fa   :  { %v1445_v3 = vmax.f32 %v1439_v2, %v1440_v59 }
 0x4fb   :  { %2322 = vmatpush3.bf16.msra.mxu0 %v2525_v55 }
 0x4fc   :  { %v1600_v5 = vpack.c.bf16 %v1445_v3, %v1445_v3  ;;  %2323 = vmatprep.subr.bf16.mxu0 %v2539_v33 }
 0x4fd   :  { %v2483_v6 = vpop.permute.xlu0 %2482 }
 0x4fe   :  { %v2485_v7 = vunpack.i.h.bf16 %v2483_v6  ;;  %v2484_v8 = vunpack.i.l.bf16 %v2483_v6  ;;  %2340 = vmatmul.mubr.msk.bf16.vlgmr.msra.gmra.mrb[32].mxu1 %vm812_vm1, %v1600_v5 }
 0x4ff   :  { %2324 = vmatpush3.bf16.msra.mxu0 %v2527_v4  ;;  %2359 = vmatprep.mubr.msk.bf16.mxu1 %vm2542_vm2, %v2539_v33 }
 0x500   :  { %v1442_v62 = vmax.f32 %v2305_v37, %v2485_v7  ;;  %v1441_v58 = vmax.f32 %v1390_v38, %v2484_v8  ;;  %2325 = vmatprep.subr.bf16.mxu0 %v2539_v33  ;;  %2356 = vmatpush3.bf16.msra.mxu1 %v2533_v0 }
 0x501   :  { %2357 = vmatprep.subr.bf16.mxu1 %v2539_v33 }
 0x502   :  { %v1446_v10 = vmax.f32 %v1441_v58, %v1442_v62 }
 0x503   :  { %2326 = vmatpush3.bf16.msra.mxu0 %v2528_v9 }
 0x504   :  { %2343 = vmatprep.subr.bf16.mxu0 %v2539_v33  ;;  %v1678_v61 = vpack.c.bf16 %v1446_v10, %v1446_v10  ;;  %2358 = vmatpush3.bf16.msra.mxu1 %v2534_v1 }
 0x506   :  { %2328 = vmatmul.mubr.msk.bf16.vlgmr.msra.gmra.mrb[36].mxu0 %vm812_vm1, %v1447_v12 }
 0x507   :  { %2344 = vmatpush3.bf16.msra.mxu0 %v2529_v11  ;;  %2351 = vmatprep.mubr.msk.bf16.mxu0 %vm2542_vm2, %v2539_v33 }
 0x508   :  { %2345 = vmatprep.subr.bf16.mxu0 %v2539_v33 }
 0x50b   :  { %2346 = vmatpush3.bf16.msra.mxu0 %v2530_v13 }
 0x50c   :  { %2347 = vmatprep.subr.bf16.mxu0 %v2539_v33 }
 0x50f   :  { %2348 = vmatpush3.bf16.msra.mxu0 %v2531_v14 }
 0x510   :  { %2349 = vmatprep.subr.bf16.mxu0 %v2539_v33 }
 0x513   :  { %2350 = vmatpush3.bf16.msra.mxu0 %v2532_v15 }
 0x516   :  { %2352 = vmatmul.mubr.msk.bf16.vlgmr.msra.gmra.mrb[40].mxu0 %vm812_vm1, %v1678_v61 }
 0x5c9   :  { %v1527_v16 = vpop.f32.mrb[32].mxu0 }
 0x5ca   :  { %v2317_v17 = vpop.f32.mrb[33].mxu0 }
 0x5cb   :  { %v1530_v18 = vpop.f32.mrb[34].mxu0 }
 0x5cc   :  { %v2318_v19 = vpop.f32.mrb[35].mxu0 }
 0x5d1   :  { %v1671_v20 = vpop.f32.mrb[32].mxu1 }
 0x5d2   :  { %v2341_v21 = vpop.f32.mrb[33].mxu1 }
 0x5d3   :  { %v1674_v22 = vpop.f32.mrb[34].mxu1 }
 0x5d4   :  { %v2342_v23 = vpop.f32.mrb[35].mxu1 }
 0x5d9   :  { %v1594_v24 = vpop.f32.mrb[36].mxu0 }
 0x5da   :  { %v1595_v25 = vadd.f32 %v1594_v24, %v1527_v16  ;;  %v2329_v26 = vpop.f32.mrb[37].mxu0 }
 0x5db   :  { %v1597_v27 = vpop.f32.mrb[38].mxu0 }
 0x5dc   :  { %v2330_v28 = vpop.f32.mrb[39].mxu0  ;;  %v1677_v29 = vadd.f32 %v1671_v20, %v1595_v25 }
 0x5e9   :  { %v1749_v33 = vpop.f32.mrb[40].mxu0 }
 0x5ea   :  { %v1755_v31 = vadd.f32 %v1749_v33, %v1677_v29  ;;  %v2353_v32 = vpop.f32.mrb[41].mxu0 }
 0x5eb   :  { %v1752_v34 = vpop.f32.mrb[42].mxu0 }
 0x5ec   :  { %v1763_v35 = vadd.f32 %v1994_v30, %v1755_v31  ;;  %v2354_v36 = vpop.f32.mrb[43].mxu0 }
 0x5ee   :  { %v1764_v37 = vmax.f32 %v1763_v35, 0.0 }
 0x5f0   :  { %v1765_v38 = vpack.c.bf16 %v1764_v37, %v1764_v37 }
 0x5f2   :  { %2360 = vmatmul.mubr.msk.bf16.vlgmr.msra.gmra.mrb[36].mxu1 %vm1789_vm3, %v1765_v38 }
 0x6c5   :  { %v1827_v40 = vpop.f32.mrb[36].mxu1 }
 0x6c6   :  { %v1828_v41 = vadd.f32 %v1995_v39, %v1827_v40  ;;  %v2361_v42 = vpop.f32.mrb[37].mxu1 }
 0x6c7   :  { %v1830_v43 = vpop.f32.mrb[38].mxu1 }
 0x6c8   :  { %v1833_v44 = vmax.f32 %v1828_v41, 0.0  ;;  %v2362_v45 = vpop.f32.mrb[39].mxu1 }
 0x6ca   :  { %v1835_v46 = vsel %vm1834_vm4, %v1833_v44, -inf }
 0x6cb   :  { %1836 = vmax.xlane.f32.xlu1 %v1835_v46 }
 0x758   :  { %v1837_v47 = vpop.xlane.xlu1 %1836 }
 0x759   :  { %v1838_v48 = vsub.f32 %v1833_v44, %v1837_v47 }
 0x75b   :  { %v1839_v49 = vmul.f32 1.442695, %v1838_v48 }
 0x75d   :  { %2535 = vpow2.f32 %v1839_v49 }
 0x767   :  { %v2536_v50 = vpop.eup %2535 }
 0x768   :  { %v1841_v52 = vsel %vm1834_vm4, %v2536_v50, 0.0 }
 0x769   :  { %1842 = vadd.xlane.f32.xlu0 %v1841_v52 }
 0x7f6   :  { %v1843_v53 = vpop.xlane.xlu0 %1842 }
 0x7f7   :  { %2537 = vrcp.f32 %v1843_v53 }
 0x801   :  { %v2538_v51 = vpop.eup %2537 }
 0x802   :  { %v1845_v54 = vmul.f32 %v2538_v51, %v2536_v50 }
 0x804   :  { %1846 = vst.msk [vmem:[%s2990_s11] sm:$0xff] %vm1834_vm4, %v1845_v54 }

</bundles_post_ra>
